<compile_context>
chip_gen: v7x
topology: tpu7x:2x2x1
jax: 0.10.0
libtpu: 0.0.40
codegen_flags: <defaults>
</compile_context>

<pallas_src>
import jax
import jax.numpy as jnp
from jax.experimental import pallas as pl
from jax.experimental.pallas import tpu as pltpu


def _round_up(x, m):
    return ((x + m - 1) // m) * m


def _cdiv(a, b):
    return -(-a // b)


def gate_model_kernel(x1_ref, x2_ref, v1_ref, v2_ref, c_ref, out_ref):
    # (TB, in) * (1, in) broadcast -> VPU; 16-wide lane reduce -> (TB, 1).
    contrib = x1_ref[...] * v1_ref[...] + x2_ref[...] * v2_ref[...]
    logits = jnp.sum(contrib, axis=1, keepdims=True) + c_ref[0]
    out_ref[...] = jax.nn.sigmoid(logits).astype(out_ref.dtype)


def prepare_gate_params(w_emb, b_emb, w_gate, b_gate):
    """One-time algebraic fold of (embedding -> concat -> gate) into
    two length-in_sz vectors and a scalar offset."""
    H = w_emb.shape[0]
    wg1 = w_gate[0, :H]                                   # (H,)
    wg2 = w_gate[0, H:]                                   # (H,)
    v1 = jnp.dot(w_emb.T, wg1).reshape(1, -1)             # (1, in_sz)
    v2 = jnp.dot(w_emb.T, wg2).reshape(1, -1)             # (1, in_sz)
    c = (jnp.dot(b_emb, wg1) + jnp.dot(b_emb, wg2) + b_gate[0]).reshape(1)
    return (v1.astype(jnp.float32),
            v2.astype(jnp.float32),
            c.astype(jnp.float32))


def _choose_tile(batch, max_tb=4096):
    """Pick a batch tile: >=2 balanced tiles for v7x megacore when possible,
    large tiles to amortize per-grid-step overhead, sublane-aligned (8)."""
    if batch <= 8:
        return 8
    num_tiles = max(2, _cdiv(batch, max_tb))
    if num_tiles % 2:
        num_tiles += 1                      # even tile count -> balanced 2-core split
    return _round_up(_cdiv(batch, num_tiles), 8)


def gate_model_forward(x1, x2, params):
    """x1, x2: (B, input_size); params from prepare_gate_params(). -> (B, 1)."""
    v1, v2, c = params
    B, in_sz = x1.shape
    out_dtype = x1.dtype

    tb = _choose_tile(B)
    grid = (_cdiv(B, tb),)                  # ragged last block handled by Pallas
    resident = lambda i: (0, 0)             # folded vectors stay resident

    return pl.pallas_call(
        gate_model_kernel,
        out_shape=jax.ShapeDtypeStruct((B, 1), out_dtype),
        grid=grid,
        in_specs=[
            pl.BlockSpec((tb, in_sz), lambda i: (i, 0)),        # x1 tile
            pl.BlockSpec((tb, in_sz), lambda i: (i, 0)),        # x2 tile
            pl.BlockSpec((1, in_sz), resident),                 # v1
            pl.BlockSpec((1, in_sz), resident),                 # v2
            pl.BlockSpec(memory_space=pltpu.MemorySpace.SMEM),  # scalar offset c
        ],
        out_specs=pl.BlockSpec((tb, 1), lambda i: (i, 0)),
        compiler_params=pltpu.CompilerParams(
            dimension_semantics=("parallel",)),
    )(x1, x2, v1, v2, c)


def _reference(x1, x2, w_emb, b_emb, w_gate, b_gate):
    e1 = x1 @ w_emb.T + b_emb
    e2 = x2 @ w_emb.T + b_emb
    return jax.nn.sigmoid(jnp.concatenate([e1, e2], axis=1) @ w_gate.T + b_gate)


if __name__ == "__main__":
    input_size = 16
    hidden_size = 32

    key = jax.random.PRNGKey(0)
    k_x1, k_x2, k_we, k_be, k_wg, k_bg = jax.random.split(key, 6)

    # Deterministic parameter init (PyTorch nn.Linear-style uniform bounds).
    bound_e = 1.0 / (input_size ** 0.5)
    w_emb = jax.random.uniform(k_we, (hidden_size, input_size),
                               minval=-bound_e, maxval=bound_e,
                               dtype=jnp.float32)
    b_emb = jax.random.uniform(k_be, (hidden_size,),
                               minval=-bound_e, maxval=bound_e,
                               dtype=jnp.float32)
    bound_g = 1.0 / ((2 * hidden_size) ** 0.5)
    w_gate = jax.random.uniform(k_wg, (1, 2 * hidden_size),
                                minval=-bound_g, maxval=bound_g,
                                dtype=jnp.float32)
    b_gate = jax.random.uniform(k_bg, (1,),
                                minval=-bound_g, maxval=bound_g,
                                dtype=jnp.float32)

    params = prepare_gate_params(w_emb, b_emb, w_gate, b_gate)

    # Small-shape check (batch=2, matches the module's toy sizes).
    batch = 2
    x1 = jax.random.normal(k_x1, (batch, input_size), dtype=jnp.float32)
    x2 = jax.random.normal(k_x2, (batch, input_size), dtype=jnp.float32)
    out = jax.block_until_ready(gate_model_forward(x1, x2, params))
    ref = _reference(x1, x2, w_emb, b_emb, w_gate, b_gate)
    assert out.shape == (batch, 1)
    assert jnp.allclose(out, ref, atol=1e-5, rtol=1e-5)

    # Larger-batch check: exercises the multi-tile "parallel" batch grid,
    # resident folded vectors, and tile selection (B=2304 -> two 1152-row tiles).
    batch_big = 2304
    kb1, kb2 = jax.random.split(jax.random.PRNGKey(1))
    xb1 = jax.random.normal(kb1, (batch_big, input_size), dtype=jnp.float32)
    xb2 = jax.random.normal(kb2, (batch_big, input_size), dtype=jnp.float32)
    out_big = jax.block_until_ready(gate_model_forward(xb1, xb2, params))
    ref_big = _reference(xb1, xb2, w_emb, b_emb, w_gate, b_gate)
    assert out_big.shape == (batch_big, 1)
    assert jnp.allclose(out_big, ref_big, atol=1e-5, rtol=1e-5)

    # Non-multiple batch: exercises the ragged last block (no wrapper-side pad).
    batch_odd = 37
    ko1, ko2 = jax.random.split(jax.random.PRNGKey(2))
    xo1 = jax.random.normal(ko1, (batch_odd, input_size), dtype=jnp.float32)
    xo2 = jax.random.normal(ko2, (batch_odd, input_size), dtype=jnp.float32)
    out_odd = jax.block_until_ready(gate_model_forward(xo1, xo2, params))
    ref_odd = _reference(xo1, xo2, w_emb, b_emb, w_gate, b_gate)
    assert out_odd.shape == (batch_odd, 1)
    assert jnp.allclose(out_odd, ref_odd, atol=1e-5, rtol=1e-5)

    print("KERNEL_OK")
</pallas_src>

<mosaic_0001>
module attributes {stable_mosaic.version = 11 : i64} {
  func.func @gate_model_kernel(%arg0: i32, %arg1: memref<8x16xf32, #tpu.memory_space<vmem>>, %arg2: memref<8x16xf32, #tpu.memory_space<vmem>>, %arg3: memref<1x16xf32, #tpu.memory_space<vmem>>, %arg4: memref<1x16xf32, #tpu.memory_space<vmem>>, %arg5: memref<1xf32, #tpu.memory_space<smem>>, %arg6: memref<8x1xf32, #tpu.memory_space<vmem>>) attributes {dimension_semantics = [#tpu.dimension_semantics<parallel>], iteration_bounds = array<i64: 1>, scalar_prefetch = 0 : i64, scratch_operands = 0 : i64, tpu.core_type = #tpu.core_type<tc>, window_params = [{transform_indices = @transform_0, window_bounds = array<i64: 8, 16>}, {transform_indices = @transform_1, window_bounds = array<i64: 8, 16>}, {pipeline_mode = #tpu.pipeline_mode<synchronous>, transform_indices = @transform_2, window_bounds = array<i64: 1, 16>}, {pipeline_mode = #tpu.pipeline_mode<synchronous>, transform_indices = @transform_3, window_bounds = array<i64: 1, 16>}, {transform_indices = @transform_4, window_bounds = array<i64: 1>}, {transform_indices = @transform_5, window_bounds = array<i64: 8, 1>}]} {
    %c0 = arith.constant 0 : index
    %c0_0 = arith.constant 0 : index
    %0 = vector.load %arg1[%c0, %c0_0] : memref<8x16xf32, #tpu.memory_space<vmem>>, vector<8x16xf32>
    %c0_1 = arith.constant 0 : index
    %c0_2 = arith.constant 0 : index
    %1 = vector.load %arg3[%c0_1, %c0_2] : memref<1x16xf32, #tpu.memory_space<vmem>>, vector<1x16xf32>
    %2 = vector.broadcast %1 : vector<1x16xf32> to vector<8x16xf32>
    %3 = arith.mulf %0, %2 : vector<8x16xf32>
    %c0_3 = arith.constant 0 : index
    %c0_4 = arith.constant 0 : index
    %4 = vector.load %arg2[%c0_3, %c0_4] : memref<8x16xf32, #tpu.memory_space<vmem>>, vector<8x16xf32>
    %c0_5 = arith.constant 0 : index
    %c0_6 = arith.constant 0 : index
    %5 = vector.load %arg4[%c0_5, %c0_6] : memref<1x16xf32, #tpu.memory_space<vmem>>, vector<1x16xf32>
    %6 = vector.broadcast %5 : vector<1x16xf32> to vector<8x16xf32>
    %7 = arith.mulf %4, %6 : vector<8x16xf32>
    %8 = arith.addf %3, %7 : vector<8x16xf32>
    %cst = arith.constant dense<0.000000e+00> : vector<8xf32>
    %9 = vector.multi_reduction <add>, %8, %cst [1] : vector<8x16xf32> to vector<8xf32>
    %10 = vector.shape_cast %9 : vector<8xf32> to vector<8x1xf32>
    %c0_7 = arith.constant 0 : index
    %11 = memref.load %arg5[%c0_7] : memref<1xf32, #tpu.memory_space<smem>>
    %12 = vector.broadcast %11 : f32 to vector<8x1xf32>
    %13 = arith.addf %10, %12 : vector<8x1xf32>
    %14 = arith.negf %13 : vector<8x1xf32>
    %15 = math.exp %14 : vector<8x1xf32>
    %cst_8 = arith.constant 1.000000e+00 : f32
    %16 = vector.broadcast %cst_8 : f32 to vector<8x1xf32>
    %17 = arith.addf %16, %15 : vector<8x1xf32>
    %18 = arith.divf %16, %17 : vector<8x1xf32>
    %c0_9 = arith.constant 0 : index
    %c0_10 = arith.constant 0 : index
    %19 = vector.load %arg6[%c0_9, %c0_10] : memref<8x1xf32, #tpu.memory_space<vmem>>, vector<8x1xf32>
    tpu.vector_store %arg6[%c0_9, %c0_10], %18 {strides = array<i32>} : memref<8x1xf32, #tpu.memory_space<vmem>>, vector<8x1xf32>,
    return
  }
  func.func @transform_0(%arg0: i32) -> (i32, i32) {
    %c0_i32 = arith.constant 0 : i32
    %c0_i32_0 = arith.constant 0 : i32
    return %arg0, %c0_i32 : i32, i32
  }
  func.func @transform_1(%arg0: i32) -> (i32, i32) {
    %c0_i32 = arith.constant 0 : i32
    %c0_i32_0 = arith.constant 0 : i32
    return %arg0, %c0_i32 : i32, i32
  }
  func.func @transform_2(%arg0: i32) -> (i32, i32) {
    %c0_i32 = arith.constant 0 : i32
    %c0_i32_0 = arith.constant 0 : i32
    %c0_i32_1 = arith.constant 0 : i32
    return %c0_i32, %c0_i32_0 : i32, i32
  }
  func.func @transform_3(%arg0: i32) -> (i32, i32) {
    %c0_i32 = arith.constant 0 : i32
    %c0_i32_0 = arith.constant 0 : i32
    %c0_i32_1 = arith.constant 0 : i32
    return %c0_i32, %c0_i32_0 : i32, i32
  }
  func.func @transform_4(%arg0: i32) -> i32 {
    %c0_i32 = arith.constant 0 : i32
    %c0_i32_0 = arith.constant 0 : i32
    return %c0_i32 : i32
  }
  func.func @transform_5(%arg0: i32) -> (i32, i32) {
    %c0_i32 = arith.constant 0 : i32
    %c0_i32_0 = arith.constant 0 : i32
    return %arg0, %c0_i32 : i32, i32
  }
}

</mosaic_0001>

<bundles_post_ra>
// kernel: tpu_custom_call.1
= control target key start
LH: loop header
LB: loop body
LE: loop exit
PB: predicated region body
PF: predicated region fallthrough
CT: control target
= control target key end

     0   :  { %vm40_vm0 = vcmask 130048   ;;  %vm53_vm1 = vcmask 7168   ;;  %s149_s0 = inlined_call_operand.vmem [shape: f32[2,16], index: 0, kind: input, shape index: {}]   ;;  %s150_s1 = inlined_call_operand.vmem [shape: f32[2,16], index: 1, kind: input, shape index: {}]   ;;  %s151_s2 = inlined_call_operand.vmem [shape: f32[1,16], index: 2, kind: input, shape index: {}]   ;;  %s152_s3 = inlined_call_operand.vmem [shape: f32[1,16], index: 3, kind: input, shape index: {}]   ;;  %s153_s4 = inlined_call_operand.<no memory space> [shape: f32[1], index: 4, kind: input, shape index: {}]   ;;  %s154_s5 = inlined_call_operand.vmem [shape: f32[2,1], index: 5, kind: output, shape index: {}]  }
   0x1   :  { %v21_v0 = vld [vmem:[%s149_s0] sm:$0xff]  ;;  %v45_v8 = vstv %s153_s4 }
   0x2   :  { %v94_v1 = vld [vmem:[%s151_s2] ss:$0 sm:$0xff] }
   0x3   :  { %v30_v2 = vld [vmem:[%s150_s1] sm:$0xff]  ;;  %v29_v3 = vmul.f32 %v94_v1, %v21_v0 }
   0x4   :  { %v95_v4 = vld [vmem:[%s152_s3] ss:$0 sm:$0xff] }
   0x5   :  { %v38_v5 = vmul.f32 %v95_v4, %v30_v2 }
   0x7   :  { %v39_v6 = vadd.f32 %v38_v5, %v29_v3 }
   0x9   :  { %v41_v7 = vsel %vm40_vm0, %v39_v6, 0.0 }
   0xa   :  { %42 = vadd.xlane.f32.xlu0 %v41_v7 }
  0x97   :  { %v43_v9 = vpop.xlane.xlu0 %42 }
  0x98   :  { %v46_v10 = vadd.f32 %v45_v8, %v43_v9 }
  0x9a   :  { %v96_v11 = vmul.f32 -1.442695, %v46_v10 }
  0x9c   :  { %97 = vpow2.f32 %v96_v11 }
  0xa6   :  { %v98_v12 = vpop.eup %97 }
  0xa7   :  { %v50_v13 = vadd.f32 1.0, %v98_v12 }
  0xa9   :  { %99 = vrcp.f32 %v50_v13 }
  0xb3   :  { %v100_v14 = vpop.eup %99 }
  0xb4   :  { %54 = vst.msk [vmem:[#allocation3] sm:$0xff] %vm53_vm1, %v100_v14 }
  0xbb   :  { %v72_v15 = vld [vmem:[#allocation3] sm:$0x3] }
  0xbc   :  { %73 = vst [vmem:[%s154_s5] sm:$0x3] %v72_v15 }

</bundles_post_ra>
